<compile_context>
chip_gen: v5e
topology: v5e:2x2
jax: 0.10.0
libtpu: 0.0.40
codegen_flags: <defaults>
</compile_context>

<pallas_src>
import functools

import jax
import jax.numpy as jnp
from jax.experimental import pallas as pl
from jax.experimental.pallas import tpu as pltpu


LANE = 128          # vreg lane width
DEFAULT_TILE = 512  # row/K tile for the adjacency (multiple of 128)


def _round_up(v, m):
    return (v + m - 1) // m * m


def _pick_tile(n, max_tile):
    """Largest power-of-two tile (>=128) that still gives >=2 row blocks when possible,
    so both TensorCores get work on v7x under dimension_semantics=("parallel", ...)."""
    t = max_tile
    while t > LANE and pl.cdiv(n, t) < 2:
        t //= 2
    return t


# ----------------------------- kernels ---------------------------------------

def _support_kernel(x_ref, w_ref, sup_ref):
    # support = x @ W_gc, f32 accumulation on the MXU, stored bf16 so the second
    # kernel streams half the bytes and feeds the MXU natively.
    sup_ref[...] = jnp.dot(
        x_ref[...], w_ref[...], preferred_element_type=jnp.float32
    ).astype(sup_ref.dtype)


def _gcn_row_kernel(adj_ref, scale_ref, sup_ref, b1_ref, w2_ref, b2_ref,
                    out_ref, acc_ref):
    # Grid = (row blocks, K blocks).  acc_ref is a (T, nhid_p) f32 accumulator that
    # persists across the K axis; output written only on the last K step.
    k = pl.program_id(1)

    @pl.when(k == 0)
    def _():
        acc_ref[...] = jnp.zeros_like(acc_ref)

    # adj streamed as int8 (exact in bf16 for |v| <= 127); per-row dequant scale is
    # applied after the dot, which is mathematically identical to scaling adj rows.
    part = jnp.dot(adj_ref[...].astype(jnp.bfloat16), sup_ref[...],
                   preferred_element_type=jnp.float32)
    acc_ref[...] += scale_ref[...] * part

    @pl.when(k == pl.num_programs(1) - 1)
    def _():
        h = jnp.maximum(acc_ref[...] + b1_ref[...], 0.0)

        # TODO(synk): dropout is identity here (inference / training=False); a training
        # version would draw a keep-mask with pltpu.prng_seed / pltpu.stateful_bernoulli.

        # logits = h @ W_lin^T + b_lin  (padded class lanes carry a -1e30 bias)
        logits = jnp.dot(h, w2_ref[...],
                         preferred_element_type=jnp.float32) + b2_ref[...]

        # log_softmax over classes; padded lanes never win the max and their exp
        # underflows to exactly 0, so the normalizer only sees real classes.
        m = jnp.max(logits, axis=1, keepdims=True)
        z = logits - m
        lse = jnp.log(jnp.sum(jnp.exp(z), axis=1, keepdims=True))
        out_ref[...] = (z - lse).astype(out_ref.dtype)


# ----------------------------- wrapper ----------------------------------------

@functools.partial(jax.jit, static_argnames=("max_tile",))
def gcn_forward(x, adj, w_gc, b_gc, w_lin, b_lin, *, max_tile=DEFAULT_TILE):
    """x: [N, nfeat], adj: [N, N], w_gc: [nfeat, nhid], b_gc: [nhid],
    w_lin: [nclass, nhid] (PyTorch Linear layout), b_lin: [nclass]."""
    N, nfeat = x.shape
    nhid = w_gc.shape[1]
    nclass = w_lin.shape[0]

    f32 = jnp.float32
    bf16 = jnp.bfloat16

    t = _pick_tile(N, max_tile)          # row tile == K tile (multiple of 128)
    n_p = _round_up(N, t)
    nfeat_p = _round_up(nfeat, LANE)
    nhid_p = _round_up(nhid, LANE)
    nclass_p = _round_up(nclass, LANE)

    # ---- wrapper prep: cast first, then pad (no padded f32 N x N intermediate) ----
    x_p = jnp.pad(x.astype(bf16), ((0, n_p - N), (0, nfeat_p - nfeat)))
    w1_p = jnp.pad(w_gc.astype(bf16), ((0, nfeat_p - nfeat), (0, nhid_p - nhid)))
    b1_p = jnp.pad(b_gc.astype(f32), (0, nhid_p - nhid)).reshape(1, nhid_p)
    w2_p = jnp.pad(w_lin.T.astype(f32),
                   ((0, nhid_p - nhid), (0, nclass_p - nclass)))
    # padded class lanes: huge negative bias -> excluded from the softmax normalizer
    b2_p = jnp.full((1, nclass_p), -1e30, f32).at[0, :nclass].set(b_lin)

    # int8 adjacency with a per-row scale (applied after the dot in-kernel).
    # TODO(synk): on v7x an fp8 (e4m3) cast would also feed the MXU natively.
    row_scale = jnp.maximum(jnp.max(jnp.abs(adj), axis=1, keepdims=True),
                            1e-12) / 127.0
    adj_q = jnp.clip(jnp.round(adj / row_scale), -127.0, 127.0).astype(jnp.int8)
    adj_p = jnp.pad(adj_q, ((0, n_p - N), (0, n_p - N)))
    scale_p = jnp.pad(row_scale.astype(f32), ((0, n_p - N), (0, 0)))

    grid_rows = n_p // t
    grid_k = n_p // t

    # Generation-aware VMEM budget.  With K-tiling, per-step need is O(t^2) and
    # independent of N, so this comfortably fits every generation.
    try:
        vmem_cap = pltpu.get_tpu_info().vmem_capacity_bytes
    except Exception:  # conservative fallback (v7x-sized)
        vmem_cap = 64 * 1024 * 1024
    vmem_est = (2 * t * t * 1                 # adj int8 double buffer
                + 2 * t * nhid_p * 2          # support K-block double buffer (bf16)
                + t * nhid_p * 4              # f32 accumulator scratch
                + 2 * t * nclass_p * 4        # output double buffer
                + 2 * t * nfeat_p * 2         # kernel-1 x tile
                + 2 * t * nhid_p * 2          # kernel-1 out tile
                + 2 * nfeat_p * nhid_p * 2    # W_gc (resident)
                + 2 * nhid_p * nclass_p * 4   # W_lin^T (resident)
                + 4 * (nhid_p + nclass_p + t) * 4
                + (4 << 20))                  # slack
    vmem_limit = int(min(max(vmem_est, 32 << 20),
                         min(100 << 20, int(vmem_cap * 0.85))))

    cparams1 = pltpu.CompilerParams(
        dimension_semantics=("parallel",), vmem_limit_bytes=vmem_limit)
    cparams2 = pltpu.CompilerParams(
        dimension_semantics=("parallel", "arbitrary"), vmem_limit_bytes=vmem_limit)

    ce1 = pl.CostEstimate(
        flops=2 * n_p * nfeat_p * nhid_p,
        transcendentals=0,
        bytes_accessed=n_p * nfeat_p * 2 + nfeat_p * nhid_p * 2 + n_p * nhid_p * 2)
    ce2 = pl.CostEstimate(
        flops=2 * n_p * n_p * nhid_p + 2 * n_p * nhid_p * nclass_p,
        transcendentals=n_p * (nclass_p + 1),
        bytes_accessed=(n_p * n_p * 1                      # int8 adj, read once
                        + grid_rows * n_p * nhid_p * 2     # support re-read per row block
                        + n_p * nclass_p * 4))

    # ---- kernel 1: support = x @ W_gc (row-blocked, W resident) ----
    support = pl.pallas_call(
        _support_kernel,
        out_shape=jax.ShapeDtypeStruct((n_p, nhid_p), bf16),
        grid=(grid_rows,),
        in_specs=[
            pl.BlockSpec((t, nfeat_p), lambda i: (i, 0)),
            pl.BlockSpec((nfeat_p, nhid_p), lambda i: (0, 0)),
        ],
        out_specs=pl.BlockSpec((t, nhid_p), lambda i: (i, 0)),
        compiler_params=cparams1,
        cost_estimate=ce1,
    )(x_p, w1_p)

    # ---- kernel 2: K-tiled adj @ support with f32 accumulator, fused epilogue ----
    # TODO(synk): for genuinely sparse adjacency (Cora-style), a PrefetchScalarGridSpec
    # gather over non-empty column blocks would skip most of the dense N x N stream.
    out_p = pl.pallas_call(
        _gcn_row_kernel,
        out_shape=jax.ShapeDtypeStruct((n_p, nclass_p), f32),
        grid=(grid_rows, grid_k),
        in_specs=[
            pl.BlockSpec((t, t), lambda i, k: (i, k)),             # adj (int8, streamed)
            pl.BlockSpec((t, 1), lambda i, k: (i, 0)),             # per-row dequant scale
            pl.BlockSpec((t, nhid_p), lambda i, k: (k, 0)),        # support K-block (bf16)
            pl.BlockSpec((1, nhid_p), lambda i, k: (0, 0)),        # b_gc
            pl.BlockSpec((nhid_p, nclass_p), lambda i, k: (0, 0)), # W_lin^T
            pl.BlockSpec((1, nclass_p), lambda i, k: (0, 0)),      # b_lin (pad lanes -1e30)
        ],
        out_specs=pl.BlockSpec((t, nclass_p), lambda i, k: (i, 0)),
        scratch_shapes=[pltpu.VMEM((t, nhid_p), jnp.float32)],
        compiler_params=cparams2,
        cost_estimate=ce2,
    )(adj_p, scale_p, support, b1_p, w2_p, b2_p)

    return out_p[:N, :nclass]


# ----------------------------- reference --------------------------------------

def reference_forward(x, adj, w_gc, b_gc, w_lin, b_lin):
    # Mirrors the kernel's quantization (bf16 x/W_gc/support, int8+per-row-scale adj);
    # all matmuls at full f32 precision (the kernel accumulates in f32 on the MXU).
    hi = jax.lax.Precision.HIGHEST
    f32 = jnp.float32
    xq = x.astype(jnp.bfloat16).astype(f32)
    wq = w_gc.astype(jnp.bfloat16).astype(f32)
    support = jnp.dot(xq, wq, precision=hi).astype(jnp.bfloat16).astype(f32)
    row_scale = jnp.maximum(jnp.max(jnp.abs(adj), axis=1, keepdims=True),
                            1e-12) / 127.0
    adj_deq = jnp.clip(jnp.round(adj / row_scale), -127.0, 127.0) * row_scale
    h = jax.nn.relu(jnp.dot(adj_deq, support, precision=hi) + b_gc)
    logits = jnp.dot(h, w_lin.T, precision=hi) + b_lin
    return jax.nn.log_softmax(logits, axis=1)


if __name__ == "__main__":
    # Small shapes consistent with the module: N nodes, nfeat -> nhid -> nclass
    N, nfeat, nhid, nclass = 8, 16, 32, 8

    key = jax.random.PRNGKey(0)
    kx, kadj, kw1, kb1, kw2, kb2 = jax.random.split(key, 6)

    x = jax.random.normal(kx, (N, nfeat), dtype=jnp.float32)

    # symmetric, row-normalized adjacency with self loops (typical GCN input)
    a = jax.random.uniform(kadj, (N, N), dtype=jnp.float32)
    a = (a + a.T) * 0.5 + jnp.eye(N, dtype=jnp.float32)
    adj = a / jnp.sum(a, axis=1, keepdims=True)

    w_gc = jax.random.uniform(kw1, (nfeat, nhid), minval=-0.1, maxval=0.1,
                              dtype=jnp.float32)
    b_gc = jax.random.uniform(kb1, (nhid,), minval=-0.1, maxval=0.1,
                              dtype=jnp.float32)
    w_lin = jax.random.uniform(kw2, (nclass, nhid), minval=-0.1, maxval=0.1,
                               dtype=jnp.float32)
    b_lin = jax.random.uniform(kb2, (nclass,), minval=-0.1, maxval=0.1,
                               dtype=jnp.float32)

    out = gcn_forward(x, adj, w_gc, b_gc, w_lin, b_lin)
    out = jax.block_until_ready(out)

    ref = reference_forward(x, adj, w_gc, b_gc, w_lin, b_lin)
    assert out.shape == (N, nclass)
    assert jnp.allclose(out, ref, atol=1e-3, rtol=1e-3), "mismatch vs reference"

    print("KERNEL_OK")
</pallas_src>

<mosaic_0001>
module attributes {stable_mosaic.version = 11 : i64} {
  func.func @_gcn_row_kernel(%arg0: i32, %arg1: i32, %arg2: memref<128x128xi8, #tpu.memory_space<vmem>>, %arg3: memref<128x1xf32, #tpu.memory_space<vmem>>, %arg4: memref<128x128xbf16, #tpu.memory_space<vmem>>, %arg5: memref<1x128xf32, #tpu.memory_space<vmem>>, %arg6: memref<128x128xf32, #tpu.memory_space<vmem>>, %arg7: memref<1x128xf32, #tpu.memory_space<vmem>>, %arg8: memref<128x128xf32, #tpu.memory_space<vmem>>, %arg9: memref<128x128xf32, #tpu.memory_space<vmem>>) attributes {dimension_semantics = [#tpu.dimension_semantics<parallel>, #tpu.dimension_semantics<arbitrary>], iteration_bounds = array<i64: 1, 1>, scalar_prefetch = 0 : i64, scratch_operands = 1 : i64, tpu.core_type = #tpu.core_type<tc>, window_params = [{transform_indices = @transform_0, window_bounds = array<i64: 128, 128>}, {transform_indices = @transform_1, window_bounds = array<i64: 128, 1>}, {transform_indices = @transform_2, window_bounds = array<i64: 128, 128>}, {pipeline_mode = #tpu.pipeline_mode<synchronous>, transform_indices = @transform_3, window_bounds = array<i64: 1, 128>}, {pipeline_mode = #tpu.pipeline_mode<synchronous>, transform_indices = @transform_4, window_bounds = array<i64: 128, 128>}, {pipeline_mode = #tpu.pipeline_mode<synchronous>, transform_indices = @transform_5, window_bounds = array<i64: 1, 128>}, {transform_indices = @transform_6, window_bounds = array<i64: 128, 128>}]} {
    %c0_i32 = arith.constant 0 : i32
    %0 = arith.cmpi eq, %arg1, %c0_i32 : i32
    %1 = arith.extui %0 : i1 to i32
    %c0_i32_0 = arith.constant 0 : i32
    %2 = arith.cmpi ne, %1, %c0_i32_0 : i32
    scf.if %2 {
      %cst_12 = arith.constant 0.000000e+00 : f32
      %16 = vector.broadcast %cst_12 : f32 to vector<128x128xf32>
      %c0_13 = arith.constant 0 : index
      %c0_14 = arith.constant 0 : index
      %17 = vector.load %arg9[%c0_13, %c0_14] : memref<128x128xf32, #tpu.memory_space<vmem>>, vector<128x128xf32>
      tpu.vector_store %arg9[%c0_13, %c0_14], %16 {strides = array<i32>} : memref<128x128xf32, #tpu.memory_space<vmem>>, vector<128x128xf32>,
    } else {
    }
    %c0 = arith.constant 0 : index
    %c0_1 = arith.constant 0 : index
    %3 = vector.load %arg2[%c0, %c0_1] : memref<128x128xi8, #tpu.memory_space<vmem>>, vector<128x128xi8>
    %4 = arith.sitofp %3 : vector<128x128xi8> to vector<128x128xbf16>
    %c0_2 = arith.constant 0 : index
    %c0_3 = arith.constant 0 : index
    %5 = vector.load %arg4[%c0_2, %c0_3] : memref<128x128xbf16, #tpu.memory_space<vmem>>, vector<128x128xbf16>
    %cst = arith.constant dense<0.000000e+00> : vector<128x128xf32>
    %6 = tpu.matmul %4, %5, %cst {dimension_numbers = #tpu.dot_dimension_numbers<[1], [0], [0], [1], [0, 0, 1, 1], [], []>} : vector<128x128xbf16>, vector<128x128xbf16>, vector<128x128xf32> -> vector<128x128xf32>
    %c0_4 = arith.constant 0 : index
    %c0_5 = arith.constant 0 : index
    %7 = vector.load %arg9[%c0_4, %c0_5] : memref<128x128xf32, #tpu.memory_space<vmem>>, vector<128x128xf32>
    %c0_6 = arith.constant 0 : index
    %c0_7 = arith.constant 0 : index
    %8 = vector.load %arg3[%c0_6, %c0_7] : memref<128x1xf32, #tpu.memory_space<vmem>>, vector<128x1xf32>
    %9 = vector.broadcast %8 : vector<128x1xf32> to vector<128x128xf32>
    %10 = arith.mulf %9, %6 : vector<128x128xf32>
    %11 = arith.addf %7, %10 : vector<128x128xf32>
    %c0_8 = arith.constant 0 : index
    %c0_9 = arith.constant 0 : index
    %12 = vector.load %arg9[%c0_8, %c0_9] : memref<128x128xf32, #tpu.memory_space<vmem>>, vector<128x128xf32>
    tpu.vector_store %arg9[%c0_8, %c0_9], %11 {strides = array<i32>} : memref<128x128xf32, #tpu.memory_space<vmem>>, vector<128x128xf32>,
    %c0_i32_10 = arith.constant 0 : i32
    %13 = arith.cmpi eq, %arg1, %c0_i32_10 : i32
    %14 = arith.extui %13 : i1 to i32
    %c0_i32_11 = arith.constant 0 : i32
    %15 = arith.cmpi ne, %14, %c0_i32_11 : i32
    scf.if %15 {
      %c0_12 = arith.constant 0 : index
      %c0_13 = arith.constant 0 : index
      %16 = vector.load %arg9[%c0_12, %c0_13] : memref<128x128xf32, #tpu.memory_space<vmem>>, vector<128x128xf32>
      %c0_14 = arith.constant 0 : index
      %c0_15 = arith.constant 0 : index
      %17 = vector.load %arg5[%c0_14, %c0_15] : memref<1x128xf32, #tpu.memory_space<vmem>>, vector<1x128xf32>
      %18 = vector.broadcast %17 : vector<1x128xf32> to vector<128x128xf32>
      %19 = arith.addf %16, %18 : vector<128x128xf32>
      %cst_16 = arith.constant 0.000000e+00 : f32
      %20 = vector.broadcast %cst_16 : f32 to vector<128x128xf32>
      %21 = arith.maximumf %19, %20 : vector<128x128xf32>
      %c0_17 = arith.constant 0 : index
      %c0_18 = arith.constant 0 : index
      %22 = vector.load %arg6[%c0_17, %c0_18] : memref<128x128xf32, #tpu.memory_space<vmem>>, vector<128x128xf32>
      %cst_19 = arith.constant dense<0.000000e+00> : vector<128x128xf32>
      %23 = tpu.matmul %21, %22, %cst_19 {dimension_numbers = #tpu.dot_dimension_numbers<[1], [0], [0], [1], [0, 0, 1, 1], [], []>} : vector<128x128xf32>, vector<128x128xf32>, vector<128x128xf32> -> vector<128x128xf32>
      %c0_20 = arith.constant 0 : index
      %c0_21 = arith.constant 0 : index
      %24 = vector.load %arg7[%c0_20, %c0_21] : memref<1x128xf32, #tpu.memory_space<vmem>>, vector<1x128xf32>
      %25 = vector.broadcast %24 : vector<1x128xf32> to vector<128x128xf32>
      %26 = arith.addf %23, %25 : vector<128x128xf32>
      %cst_22 = arith.constant dense<0xFF800000> : vector<128xf32>
      %27 = vector.multi_reduction <maximumf>, %26, %cst_22 [1] : vector<128x128xf32> to vector<128xf32>
      %28 = vector.shape_cast %27 : vector<128xf32> to vector<128x1xf32>
      %29 = vector.broadcast %28 : vector<128x1xf32> to vector<128x128xf32>
      %30 = arith.subf %26, %29 : vector<128x128xf32>
      %31 = math.exp %30 : vector<128x128xf32>
      %cst_23 = arith.constant dense<0.000000e+00> : vector<128xf32>
      %32 = vector.multi_reduction <add>, %31, %cst_23 [1] : vector<128x128xf32> to vector<128xf32>
      %33 = vector.shape_cast %32 : vector<128xf32> to vector<128x1xf32>
      %34 = math.log %33 : vector<128x1xf32>
      %35 = vector.broadcast %34 : vector<128x1xf32> to vector<128x128xf32>
      %36 = arith.subf %30, %35 : vector<128x128xf32>
      %c0_24 = arith.constant 0 : index
      %c0_25 = arith.constant 0 : index
      %37 = vector.load %arg8[%c0_24, %c0_25] : memref<128x128xf32, #tpu.memory_space<vmem>>, vector<128x128xf32>
      tpu.vector_store %arg8[%c0_24, %c0_25], %36 {strides = array<i32>} : memref<128x128xf32, #tpu.memory_space<vmem>>, vector<128x128xf32>,
    } else {
    }
    return
  }
  func.func @transform_0(%arg0: i32, %arg1: i32) -> (i32, i32) {
    %c0_i32 = arith.constant 0 : i32
    return %arg0, %arg1 : i32, i32
  }
  func.func @transform_1(%arg0: i32, %arg1: i32) -> (i32, i32) {
    %c0_i32 = arith.constant 0 : i32
    %c0_i32_0 = arith.constant 0 : i32
    return %arg0, %c0_i32 : i32, i32
  }
  func.func @transform_2(%arg0: i32, %arg1: i32) -> (i32, i32) {
    %c0_i32 = arith.constant 0 : i32
    %c0_i32_0 = arith.constant 0 : i32
    return %arg1, %c0_i32 : i32, i32
  }
  func.func @transform_3(%arg0: i32, %arg1: i32) -> (i32, i32) {
    %c0_i32 = arith.constant 0 : i32
    %c0_i32_0 = arith.constant 0 : i32
    %c0_i32_1 = arith.constant 0 : i32
    return %c0_i32, %c0_i32_0 : i32, i32
  }
  func.func @transform_4(%arg0: i32, %arg1: i32) -> (i32, i32) {
    %c0_i32 = arith.constant 0 : i32
    %c0_i32_0 = arith.constant 0 : i32
    %c0_i32_1 = arith.constant 0 : i32
    return %c0_i32, %c0_i32_0 : i32, i32
  }
  func.func @transform_5(%arg0: i32, %arg1: i32) -> (i32, i32) {
    %c0_i32 = arith.constant 0 : i32
    %c0_i32_0 = arith.constant 0 : i32
    %c0_i32_1 = arith.constant 0 : i32
    return %c0_i32, %c0_i32_0 : i32, i32
  }
  func.func @transform_6(%arg0: i32, %arg1: i32) -> (i32, i32) {
    %c0_i32 = arith.constant 0 : i32
    %c0_i32_0 = arith.constant 0 : i32
    return %arg0, %c0_i32 : i32, i32
  }
}

module attributes {stable_mosaic.version = 11 : i64} {
  func.func @_support_kernel(%arg0: i32, %arg1: memref<128x128xbf16, #tpu.memory_space<vmem>>, %arg2: memref<128x128xbf16, #tpu.memory_space<vmem>>, %arg3: memref<128x128xbf16, #tpu.memory_space<vmem>>) attributes {dimension_semantics = [#tpu.dimension_semantics<parallel>], iteration_bounds = array<i64: 1>, scalar_prefetch = 0 : i64, scratch_operands = 0 : i64, tpu.core_type = #tpu.core_type<tc>, window_params = [{transform_indices = @transform_0, window_bounds = array<i64: 128, 128>}, {pipeline_mode = #tpu.pipeline_mode<synchronous>, transform_indices = @transform_1, window_bounds = array<i64: 128, 128>}, {transform_indices = @transform_2, window_bounds = array<i64: 128, 128>}]} {
    %c0 = arith.constant 0 : index
    %c0_0 = arith.constant 0 : index
    %0 = vector.load %arg1[%c0, %c0_0] : memref<128x128xbf16, #tpu.memory_space<vmem>>, vector<128x128xbf16>
    %c0_1 = arith.constant 0 : index
    %c0_2 = arith.constant 0 : index
    %1 = vector.load %arg2[%c0_1, %c0_2] : memref<128x128xbf16, #tpu.memory_space<vmem>>, vector<128x128xbf16>
    %cst = arith.constant dense<0.000000e+00> : vector<128x128xf32>
    %2 = tpu.matmul %0, %1, %cst {dimension_numbers = #tpu.dot_dimension_numbers<[1], [0], [0], [1], [0, 0, 1, 1], [], []>} : vector<128x128xbf16>, vector<128x128xbf16>, vector<128x128xf32> -> vector<128x128xf32>
    %3 = arith.truncf %2 : vector<128x128xf32> to vector<128x128xbf16>
    %c0_3 = arith.constant 0 : index
    %c0_4 = arith.constant 0 : index
    %4 = vector.load %arg3[%c0_3, %c0_4] : memref<128x128xbf16, #tpu.memory_space<vmem>>, vector<128x128xbf16>
    tpu.vector_store %arg3[%c0_3, %c0_4], %3 {strides = array<i32>} : memref<128x128xbf16, #tpu.memory_space<vmem>>, vector<128x128xbf16>,
    return
  }
  func.func @transform_0(%arg0: i32) -> (i32, i32) {
    %c0_i32 = arith.constant 0 : i32
    %c0_i32_0 = arith.constant 0 : i32
    return %arg0, %c0_i32 : i32, i32
  }
  func.func @transform_1(%arg0: i32) -> (i32, i32) {
    %c0_i32 = arith.constant 0 : i32
    %c0_i32_0 = arith.constant 0 : i32
    %c0_i32_1 = arith.constant 0 : i32
    return %c0_i32, %c0_i32_0 : i32, i32
  }
  func.func @transform_2(%arg0: i32) -> (i32, i32) {
    %c0_i32 = arith.constant 0 : i32
    %c0_i32_0 = arith.constant 0 : i32
    return %arg0, %c0_i32 : i32, i32
  }
}

</mosaic_0001>

<bundles_post_ra>
// kernel: gcn_forward.2
= control target key start
LH: loop header
LB: loop body
LE: loop exit
PB: predicated region body
PF: predicated region fallthrough
CT: control target
= control target key end

     0   :  { %s462_s1 = inlined_call_operand.vmem [shape: bf16[128,128], index: 1, kind: input, shape index: {}]   ;;  %s463_s0 = inlined_call_operand.vmem [shape: bf16[128,128], index: 0, kind: input, shape index: {}]   ;;  %s464_s2 = inlined_call_operand.vmem [shape: bf16[128,128], index: 2, kind: output, shape index: {}]  }
   0x1   :  { %v303_v0 = vld [vmem:[%s462_s1 + $0x38] sm:$0xff]  ;;  %v302_v1 = vld [vmem:[%s462_s1 + $0x30] sm:$0xff]  ;;  %v301_v2 = vld [vmem:[%s462_s1 + $0x28] sm:$0xff] }
   0x2   :  { %139 = vmatpush.bf16.msra.mxu0 %v303_v0  ;;  %351 = vmatpush.bf16.msra.mxu1 %v303_v0  ;;  %v300_v3 = vld [vmem:[%s462_s1 + $0x20] sm:$0xff]  ;;  %v299_v4 = vld [vmem:[%s462_s1 + $0x18] sm:$0xff]  ;;  %v298_v5 = vld [vmem:[%s462_s1 + $0x10] sm:$0xff] }
   0x3   :  { %352 = vmatpush.bf16.msra.mxu2 %v303_v0  ;;  %353 = vmatpush.bf16.msra.mxu3 %v303_v0  ;;  %v297_v6 = vld [vmem:[%s462_s1 + $0x8] sm:$0xff]  ;;  %v296_v7 = vld [vmem:[%s462_s1] sm:$0xff]  ;;  %v290_v9 = vld [vmem:[%s463_s0 + $0x10] sm:$0xff] }
   0x4   :  { %v288_v8 = vld [vmem:[%s463_s0] sm:$0xff]  ;;  %v294_v11 = vld [vmem:[%s463_s0 + $0x30] sm:$0xff]  ;;  %v289_v12 = vld [vmem:[%s463_s0 + $0x8] sm:$0xff] }
   0x5   :  { %v292_v10 = vld [vmem:[%s463_s0 + $0x20] sm:$0xff]  ;;  %v291_v13 = vld [vmem:[%s463_s0 + $0x18] sm:$0xff]  ;;  %v293_v14 = vld [vmem:[%s463_s0 + $0x28] sm:$0xff] }
   0x6   :  { %140 = vmatpush.bf16.msra.mxu0 %v302_v1  ;;  %354 = vmatpush.bf16.msra.mxu1 %v302_v1  ;;  %v295_v15 = vld [vmem:[%s463_s0 + $0x38] sm:$0xff] }
   0x7   :  { %355 = vmatpush.bf16.msra.mxu2 %v302_v1  ;;  %356 = vmatpush.bf16.msra.mxu3 %v302_v1 }
   0xa   :  { %141 = vmatpush.bf16.msra.mxu0 %v301_v2  ;;  %357 = vmatpush.bf16.msra.mxu1 %v301_v2 }
   0xb   :  { %358 = vmatpush.bf16.msra.mxu2 %v301_v2  ;;  %359 = vmatpush.bf16.msra.mxu3 %v301_v2 }
   0xe   :  { %142 = vmatpush.bf16.msra.mxu0 %v300_v3  ;;  %360 = vmatpush.bf16.msra.mxu1 %v300_v3 }
   0xf   :  { %361 = vmatpush.bf16.msra.mxu2 %v300_v3  ;;  %362 = vmatpush.bf16.msra.mxu3 %v300_v3 }
  0x12   :  { %143 = vmatpush.bf16.msra.mxu0 %v299_v4  ;;  %363 = vmatpush.bf16.msra.mxu1 %v299_v4 }
  0x13   :  { %364 = vmatpush.bf16.msra.mxu2 %v299_v4  ;;  %365 = vmatpush.bf16.msra.mxu3 %v299_v4 }
  0x16   :  { %144 = vmatpush.bf16.msra.mxu0 %v298_v5  ;;  %366 = vmatpush.bf16.msra.mxu1 %v298_v5 }
  0x17   :  { %367 = vmatpush.bf16.msra.mxu2 %v298_v5  ;;  %368 = vmatpush.bf16.msra.mxu3 %v298_v5 }
  0x1a   :  { %145 = vmatpush.bf16.msra.mxu0 %v297_v6  ;;  %369 = vmatpush.bf16.msra.mxu1 %v297_v6 }
  0x1b   :  { %370 = vmatpush.bf16.msra.mxu2 %v297_v6  ;;  %371 = vmatpush.bf16.msra.mxu3 %v297_v6 }
  0x1e   :  { %146 = vmatpush.bf16.msra.mxu0 %v296_v7  ;;  %372 = vmatpush.bf16.msra.mxu1 %v296_v7 }
  0x1f   :  { %373 = vmatpush.bf16.msra.mxu2 %v296_v7  ;;  %374 = vmatpush.bf16.msra.mxu3 %v296_v7 }
  0x21   :  { %147 = vmatmul.bf16.vlgmr.msra.gmra.mxu0 %v288_v8  ;;  %157 = vmatmul.bf16.vlgmr.msra.gmra.mxu1 %v290_v9 }
  0x22   :  { %167 = vmatmul.bf16.vlgmr.msra.gmra.mxu2 %v292_v10  ;;  %177 = vmatmul.bf16.vlgmr.msra.gmra.mxu3 %v294_v11 }
  0x31   :  { %152 = vmatmul.bf16.gmra.mxu0 %v289_v12  ;;  %162 = vmatmul.bf16.gmra.mxu1 %v291_v13 }
  0x32   :  { %172 = vmatmul.bf16.gmra.mxu2 %v293_v14  ;;  %182 = vmatmul.bf16.gmra.mxu3 %v295_v15 }
  0x9e   :  { %v148_v16 = vpop.f32.mrf.mxu0  ;;  %v158_v17 = vpop.f32.mrf.mxu1 }
  0xa5   :  { %v168_v18 = vpop.f32.mrf.mxu2  ;;  %v178_v19 = vpop.f32.mrf.mxu3 }
  0xa6   :  { %v150_v20 = vpop.f32.mrf.mxu0  ;;  %v160_v21 = vpop.f32.mrf.mxu1 }
  0xa7   :  { %v307_v22 = vpack.c.bf16 %v150_v20, %v148_v16  ;;  %v317_v23 = vpack.c.bf16 %v160_v21, %v158_v17 }
  0xa9   :  { %308 = vst [vmem:[%s464_s2] sm:$0xff] %v307_v22  }
  0xaa   :  { %345 = vst [vmem:[%s464_s2 + $0x10] sm:$0xff] %v317_v23  }
  0xad   :  { %v170_v24 = vpop.f32.mrf.mxu2  ;;  %v180_v25 = vpop.f32.mrf.mxu3 }
  0xae   :  { %v327_v26 = vpack.c.bf16 %v170_v24, %v168_v18  ;;  %v337_v27 = vpack.c.bf16 %v180_v25, %v178_v19  ;;  %v153_v28 = vpop.f32.mrf.mxu0  ;;  %v163_v29 = vpop.f32.mrf.mxu1 }
  0xb0   :  { %347 = vst [vmem:[%s464_s2 + $0x20] sm:$0xff] %v327_v26  }
  0xb1   :  { %349 = vst [vmem:[%s464_s2 + $0x30] sm:$0xff] %v337_v27  }
  0xb5   :  { %v173_v30 = vpop.f32.mrf.mxu2  ;;  %v183_v31 = vpop.f32.mrf.mxu3 }
  0xb6   :  { %v155_v32 = vpop.f32.mrf.mxu0  ;;  %v165_v33 = vpop.f32.mrf.mxu1 }
  0xb7   :  { %v312_v34 = vpack.c.bf16 %v155_v32, %v153_v28  ;;  %v322_v35 = vpack.c.bf16 %v165_v33, %v163_v29 }
  0xb9   :  { %344 = vst [vmem:[%s464_s2 + $0x8] sm:$0xff] %v312_v34  }
  0xba   :  { %346 = vst [vmem:[%s464_s2 + $0x18] sm:$0xff] %v322_v35  }
  0xbd   :  { %v175_v36 = vpop.f32.mrf.mxu2  ;;  %v185_v37 = vpop.f32.mrf.mxu3 }
  0xbe   :  { %v332_v38 = vpack.c.bf16 %v175_v36, %v173_v30  ;;  %v342_v39 = vpack.c.bf16 %v185_v37, %v183_v31 }
  0xc0   :  { %348 = vst [vmem:[%s464_s2 + $0x28] sm:$0xff] %v332_v38  }
  0xc1   :  { %350 = vst [vmem:[%s464_s2 + $0x38] sm:$0xff] %v342_v39  }

// kernel: gcn_forward.3
= control target key start
LH: loop header
LB: loop body
LE: loop exit
PB: predicated region body
PF: predicated region fallthrough
CT: control target
= control target key end

     0   :  { %v814_v0 = vmov 0   ;;  %s1154_s1 = inlined_call_operand.vmem [shape: f32[128,1], index: 1, kind: input, shape index: {}]   ;;  %s1155_s2 = inlined_call_operand.vmem [shape: bf16[128,128], index: 2, kind: input, shape index: {}]   ;;  %s1156_s0 = inlined_call_operand.vmem [shape: s8[128,128], index: 0, kind: input, shape index: {}]   ;;  %s1157_s3 = inlined_call_operand.vmem [shape: f32[1,128], index: 3, kind: input, shape index: {}]   ;;  %s1158_s4 = inlined_call_operand.vmem [shape: f32[128,128], index: 4, kind: input, shape index: {}]   ;;  %s1159_s5 = inlined_call_operand.vmem [shape: f32[1,128], index: 5, kind: input, shape index: {}]   ;;  %s1160_s6 = inlined_call_operand.vmem [shape: f32[128,128], index: 6, kind: output, shape index: {}]  }
   0x1   :  { %745 = vset.pattern.permute.xlu0 %v814_v0  ;;  %v224_v1 = vld [vmem:[%s1154_s1 + $0x40] sm:$0xff]  ;;  %v719_v2 = vld [vmem:[%s1155_s2 + $0x38] sm:$0xff]  ;;  %746 = vset.pattern.permute.xlu1 %v814_v0  ;;  %v718_v3 = vld [vmem:[%s1155_s2 + $0x30] sm:$0xff] }
   0x2   :  { %274 = vperm.xlu0 %745, %v224_v1   ;;  %747 = vset.pattern.permute.xlu2 %v814_v0  ;;  %v225_v4 = vld [vmem:[%s1154_s1 + $0x48] sm:$0xff]  ;;  %v216_v5 = vld [vmem:[%s1154_s1] sm:$0xff]  ;;  %v226_v8 = vld [vmem:[%s1154_s1 + $0x50] sm:$0xff] }
   0x3   :  { %151 = vmatpush.bf16.msra.mxu0 %v719_v2  ;;  %720 = vmatpush.bf16.msra.mxu2 %v719_v2  ;;  %v717_v6 = vld [vmem:[%s1155_s2 + $0x28] sm:$0xff]  ;;  %v716_v9 = vld [vmem:[%s1155_s2 + $0x20] sm:$0xff]  ;;  %v227_v10 = vld [vmem:[%s1154_s1 + $0x58] sm:$0xff] }
   0x4   :  { %279 = vperm.xlu1 %746, %v225_v4   ;;  %v217_v7 = vld [vmem:[%s1154_s1 + $0x8] sm:$0xff]  ;;  %284 = vperm.xlu2 %747, %v226_v8   ;;  %v715_v11 = vld [vmem:[%s1155_s2 + $0x18] sm:$0xff]  ;;  %v714_v13 = vld [vmem:[%s1155_s2 + $0x10] sm:$0xff] }
   0x5   :  { %v219_v12 = vld [vmem:[%s1154_s1 + $0x18] sm:$0xff]  ;;  %v43_v14 = vld [vmem:[%s1156_s0] sm:$0xff]  ;;  %v218_v15 = vld [vmem:[%s1154_s1 + $0x10] sm:$0xff] }
   0x6   :  { %v45_v16 = vld [vmem:[%s1156_s0 + $0x10] sm:$0xff]  ;;  %v47_v17 = vunpack.c.0.s8 %v43_v14  ;;  %v48_v18 = vunpack.c.1.s8 %v43_v14  ;;  %v220_v19 = vld [vmem:[%s1154_s1 + $0x20] sm:$0xff]  ;;  %v713_v20 = vld [vmem:[%s1155_s2 + $0x8] sm:$0xff]  ;;  %v49_v35 = vunpack.c.2.s8 %v43_v14  ;;  %v50_v36 = vunpack.c.3.s8 %v43_v14 }
   0x7   :  { %152 = vmatpush.bf16.msra.mxu0 %v718_v3  ;;  %721 = vmatpush.bf16.msra.mxu2 %v718_v3  ;;  %v55_v21 = vunpack.c.0.s8 %v45_v16  ;;  %v56_v22 = vunpack.c.1.s8 %v45_v16  ;;  %v229_v23 = vld [vmem:[%s1154_s1 + $0x68] sm:$0xff]  ;;  %v228_v24 = vld [vmem:[%s1154_s1 + $0x60] sm:$0xff]  ;;  %v230_v31 = vld [vmem:[%s1154_s1 + $0x70] sm:$0xff]  ;;  %v57_v38 = vunpack.c.2.s8 %v45_v16  ;;  %v58_v39 = vunpack.c.3.s8 %v45_v16 }
   0x8   :  { %v63_v25 = vcvt.s32.f32 %v47_v17  ;;  %v64_v26 = vcvt.s32.f32 %v48_v18  ;;  %v712_v27 = vld [vmem:[%s1155_s2] sm:$0xff]  ;;  %v222_v33 = vld [vmem:[%s1154_s1 + $0x30] sm:$0xff]  ;;  %v221_v34 = vld [vmem:[%s1154_s1 + $0x28] sm:$0xff]  ;;  %v65_v41 = vcvt.s32.f32 %v49_v35  ;;  %v66_v42 = vcvt.s32.f32 %v50_v36 }
   0x9   :  { %v71_v28 = vcvt.s32.f32 %v55_v21  ;;  %v72_v29 = vcvt.s32.f32 %v56_v22  ;;  %v223_v37 = vld [vmem:[%s1154_s1 + $0x38] sm:$0xff]  ;;  %v73_v43 = vcvt.s32.f32 %v57_v38  ;;  %v74_v44 = vcvt.s32.f32 %v58_v39  ;;  %v44_v47 = vld [vmem:[%s1156_s0 + $0x8] sm:$0xff]  ;;  %v427_v8 = vld [vmem:[%s1158_s4 + $0x60] sm:$0xff] }
   0xa   :  { %234 = vperm.xlu0 %745, %v216_v5   ;;  %v79_v30 = vpack.c.bf16 %v64_v26, %v63_v25  ;;  %v231_v40 = vld [vmem:[%s1154_s1 + $0x78] sm:$0xff]  ;;  %v80_v45 = vpack.c.bf16 %v66_v42, %v65_v41  ;;  %v51_v49 = vunpack.c.0.s8 %v44_v47  ;;  %v52_v50 = vunpack.c.1.s8 %v44_v47  ;;  %v421_v14 = vld [vmem:[%s1158_s4 + $0x30] sm:$0xff]  ;;  %v419_v16 = vld [vmem:[%s1158_s4 + $0x20] sm:$0xff] }
   0xb   :  { %153 = vmatpush.bf16.msra.mxu0 %v717_v6  ;;  %722 = vmatpush.bf16.msra.mxu2 %v717_v6  ;;  %v83_v32 = vpack.c.bf16 %v72_v29, %v71_v28  ;;  %v84_v46 = vpack.c.bf16 %v74_v44, %v73_v43  ;;  %v46_v48 = vld [vmem:[%s1156_s0 + $0x18] sm:$0xff]  ;;  %v53_v59 = vunpack.c.2.s8 %v44_v47  ;;  %v54_v60 = vunpack.c.3.s8 %v44_v47  ;;  %v429_v6 = vld [vmem:[%s1158_s4 + $0x70] sm:$0xff] }
   0xc   :  { %239 = vperm.xlu1 %746, %v217_v7   ;;  %244 = vperm.xlu2 %747, %v218_v15   ;;  %v59_v51 = vunpack.c.0.s8 %v46_v48  ;;  %v60_v52 = vunpack.c.1.s8 %v46_v48  ;;  %v67_v53 = vcvt.s32.f32 %v51_v49  ;;  %v68_v54 = vcvt.s32.f32 %v52_v50  ;;  %v430_v5 = vld [vmem:[%s1158_s4 + $0x78] sm:$0xff]  ;;  %v428_v7 = vld [vmem:[%s1158_s4 + $0x68] sm:$0xff]  ;;  %v417_v18 = vld [vmem:[%s1158_s4 + $0x10] sm:$0xff] }
   0xd   :  { %v61_v61 = vunpack.c.2.s8 %v46_v48  ;;  %v62_v62 = vunpack.c.3.s8 %v46_v48  ;;  %v69_v63 = vcvt.s32.f32 %v53_v59  ;;  %v70_v0 = vcvt.s32.f32 %v54_v60  ;;  %435 = vmatpush.msra.mxu1 %v430_v5  ;;  %728 = vmatpush.msra.mxu3 %v430_v5  ;;  %v420_v15 = vld [vmem:[%s1158_s4 + $0x28] sm:$0xff]  ;;  %v418_v17 = vld [vmem:[%s1158_s4 + $0x18] sm:$0xff] }
   0xe   :  { %v75_v55 = vcvt.s32.f32 %v59_v51  ;;  %v76_v56 = vcvt.s32.f32 %v60_v52  ;;  %v81_v57 = vpack.c.bf16 %v68_v54, %v67_v53 }
   0xf   :  { %154 = vmatpush.bf16.msra.mxu0 %v716_v9  ;;  %723 = vmatpush.bf16.msra.mxu2 %v716_v9  ;;  %v77_v1 = vcvt.s32.f32 %v61_v61  ;;  %v78_v2 = vcvt.s32.f32 %v62_v62  ;;  %v82_v3 = vpack.c.bf16 %v70_v0, %v69_v63  ;;  %v426_v9 = vld [vmem:[%s1158_s4 + $0x58] sm:$0xff] }
  0x10   :  { %v85_v58 = vpack.c.bf16 %v76_v56, %v75_v55  ;;  %436 = vmatpush.msra.mxu1 %v429_v6  ;;  %729 = vmatpush.msra.mxu3 %v429_v6 }
  0x11   :  { %v86_v4 = vpack.c.bf16 %v78_v2, %v77_v1 }
  0x12   :  { %289 = vperm.xlu0 %745, %v227_v10   ;;  %437 = vmatpush.msra.mxu1 %v428_v7  ;;  %v425_v10 = vld [vmem:[%s1158_s4 + $0x50] sm:$0xff] }
  0x13   :  { %155 = vmatpush.bf16.msra.mxu0 %v715_v11  ;;  %724 = vmatpush.bf16.msra.mxu2 %v715_v11  ;;  %v424_v11 = vld [vmem:[%s1158_s4 + $0x48] sm:$0xff] }
  0x14   :  { %249 = vperm.xlu1 %746, %v219_v12   ;;  %294 = vperm.xlu2 %747, %v228_v24   ;;  %v423_v12 = vld [vmem:[%s1158_s4 + $0x40] sm:$0xff] }
  0x15   :  { %730 = vmatpush.msra.mxu3 %v428_v7  ;;  %438 = vmatpush.msra.mxu1 %v427_v8 }
  0x17   :  { %156 = vmatpush.bf16.msra.mxu0 %v714_v13  ;;  %725 = vmatpush.bf16.msra.mxu2 %v714_v13  ;;  %v422_v13 = vld [vmem:[%s1158_s4 + $0x38] sm:$0xff] }
  0x18   :  { %731 = vmatpush.msra.mxu3 %v427_v8  ;;  %439 = vmatpush.msra.mxu1 %v426_v9 }
  0x1a   :  { %254 = vperm.xlu0 %745, %v220_v19   ;;  %732 = vmatpush.msra.mxu3 %v426_v9  ;;  %v416_v19 = vld [vmem:[%s1158_s4 + $0x8] sm:$0xff] }
  0x1b   :  { %157 = vmatpush.bf16.msra.mxu0 %v713_v20  ;;  %726 = vmatpush.bf16.msra.mxu2 %v713_v20  ;;  %v415_v20 = vld [vmem:[%s1158_s4] sm:$0xff] }
  0x1c   :  { %299 = vperm.xlu1 %746, %v229_v23   ;;  %259 = vperm.xlu2 %747, %v221_v34   ;;  %v985_v23 = vld [vmem:[%s1157_s3] ss:$0 sm:$0xff] }
  0x1d   :  { %440 = vmatpush.msra.mxu1 %v425_v10  ;;  %733 = vmatpush.msra.mxu3 %v425_v10 }
  0x1f   :  { %158 = vmatpush.bf16.msra.mxu0 %v712_v27  ;;  %727 = vmatpush.bf16.msra.mxu2 %v712_v27 }
  0x20   :  { %441 = vmatpush.msra.mxu1 %v424_v11  ;;  %734 = vmatpush.msra.mxu3 %v424_v11 }
  0x22   :  { %304 = vperm.xlu0 %745, %v230_v31   ;;  %159 = vmatmul.bf16.vlgmr.msra.gmra.mxu0 %v79_v30 }
  0x23   :  { %179 = vmatmul.bf16.vlgmr.msra.gmra.mxu2 %v83_v32  ;;  %442 = vmatpush.msra.mxu1 %v423_v12 }
  0x24   :  { %264 = vperm.xlu1 %746, %v222_v33   ;;  %309 = vperm.xlu2 %747, %v231_v40  }
  0x25   :  { %735 = vmatpush.msra.mxu3 %v423_v12  ;;  %443 = vmatpush.msra.mxu1 %v422_v13 }
  0x27   :  { %736 = vmatpush.msra.mxu3 %v422_v13  ;;  %444 = vmatpush.msra.mxu1 %v421_v14 }
  0x29   :  { %737 = vmatpush.msra.mxu3 %v421_v14  ;;  %445 = vmatpush.msra.mxu1 %v420_v15 }
  0x2a   :  { %269 = vperm.xlu0 %745, %v223_v37  }
  0x2b   :  { %738 = vmatpush.msra.mxu3 %v420_v15  ;;  %446 = vmatpush.msra.mxu1 %v419_v16 }
  0x2d   :  { %739 = vmatpush.msra.mxu3 %v419_v16  ;;  %447 = vmatpush.msra.mxu1 %v418_v17 }
  0x2f   :  { %740 = vmatpush.msra.mxu3 %v418_v17  ;;  %448 = vmatpush.msra.mxu1 %v417_v18 }
  0x31   :  { %741 = vmatpush.msra.mxu3 %v417_v18  ;;  %449 = vmatpush.msra.mxu1 %v416_v19 }
  0x32   :  { %164 = vmatmul.bf16.gmra.mxu0 %v80_v45 }
  0x33   :  { %184 = vmatmul.bf16.gmra.mxu2 %v84_v46  ;;  %742 = vmatpush.msra.mxu3 %v416_v19 }
  0x34   :  { %450 = vmatpush.msra.mxu1 %v415_v20 }
  0x35   :  { %743 = vmatpush.msra.mxu3 %v415_v20 }
  0x42   :  { %169 = vmatmul.bf16.gmra.mxu0 %v81_v57 }
  0x43   :  { %189 = vmatmul.bf16.gmra.mxu2 %v85_v58 }
  0x52   :  { %174 = vmatmul.bf16.gmra.mxu0 %v82_v3 }
  0x53   :  { %194 = vmatmul.bf16.gmra.mxu2 %v86_v4 }
  0x5e   :  { %v285_v29 = vpop.permute.xlu2 %284 }
  0x66   :  { %v245_v40 = vpop.permute.xlu2 %244 }
  0x6e   :  { %v295_v58 = vpop.permute.xlu2 %294 }
  0x74   :  { %v275_v21 = vpop.permute.xlu0 %274 }
  0x76   :  { %v280_v22 = vpop.permute.xlu1 %279  ;;  %v260_v6 = vpop.permute.xlu2 %259 }
  0x7c   :  { %v235_v24 = vpop.permute.xlu0 %234 }
  0x7e   :  { %v240_v31 = vpop.permute.xlu1 %239 }
  0x84   :  { %v290_v48 = vpop.permute.xlu0 %289 }
  0x86   :  { %v250_v50 = vpop.permute.xlu1 %249 }
  0x8c   :  { %v255_v60 = vpop.permute.xlu0 %254 }
  0x8e   :  { %v300_v4 = vpop.permute.xlu1 %299 }
  0x94   :  { %v305_v14 = vpop.permute.xlu0 %304 }
  0x96   :  { %v265_v16 = vpop.permute.xlu1 %264 }
  0x9f   :  { %v160_v25 = vpop.f32.mrf.mxu0 }
  0xa0   :  { %v312_v26 = vmul.f32 %v235_v24, %v160_v25 }
  0xa2   :  { %v383_v27 = vadd.f32 %v985_v23, %v312_v26  ;;  %v270_v26 = vpop.permute.xlu0 %269 }
  0xa4   :  { %v399_v28 = vmax.f32 %v383_v27, 0.0 }
  0xa6   :  { %v180_v30 = vpop.f32.mrf.mxu2  ;;  %451 = vmatmul.f32.vlgmr.msra.gmra.mxu1 %v399_v28 }
  0xa7   :  { %v320_v32 = vmul.f32 %v275_v21, %v180_v30  ;;  %v162_v33 = vpop.f32.mrf.mxu0 }
  0xa8   :  { %v313_v34 = vmul.f32 %v240_v31, %v162_v33 }
  0xa9   :  { %v391_v35 = vadd.f32 %v985_v23, %v320_v32 }
  0xaa   :  { %v384_v36 = vadd.f32 %v985_v23, %v313_v34  ;;  %v310_v34 = vpop.permute.xlu2 %309 }
  0xab   :  { %v407_v37 = vmax.f32 %v391_v35, 0.0 }
  0xac   :  { %v400_v38 = vmax.f32 %v384_v36, 0.0 }
  0xad   :  { %475 = vmatmul.f32.vlgmr.msra.gmra.mxu3 %v407_v37 }
  0xae   :  { %v182_v39 = vpop.f32.mrf.mxu2  ;;  %454 = vmatmul.f32.gmra.mxu1 %v400_v38 }
  0xaf   :  { %v321_v41 = vmul.f32 %v280_v22, %v182_v39  ;;  %v165_v42 = vpop.f32.mrf.mxu0  ;;  %v749_v39 = vld [vmem:[%s1159_s5] ss:$0 sm:$0xff] }
  0xb0   :  { %v314_v43 = vmul.f32 %v245_v40, %v165_v42 }
  0xb1   :  { %v392_v44 = vadd.f32 %v985_v23, %v321_v41 }
  0xb2   :  { %v385_v45 = vadd.f32 %v985_v23, %v314_v43 }
  0xb3   :  { %v408_v46 = vmax.f32 %v392_v44, 0.0 }
  0xb4   :  { %v401_v47 = vmax.f32 %v385_v45, 0.0 }
  0xb5   :  { %478 = vmatmul.f32.gmra.mxu3 %v408_v46 }
  0xb6   :  { %v185_v49 = vpop.f32.mrf.mxu2  ;;  %457 = vmatmul.f32.gmra.mxu1 %v401_v47 }
  0xb7   :  { %v322_v51 = vmul.f32 %v285_v29, %v185_v49  ;;  %v167_v52 = vpop.f32.mrf.mxu0 }
  0xb8   :  { %v315_v53 = vmul.f32 %v250_v50, %v167_v52 }
  0xb9   :  { %v393_v54 = vadd.f32 %v985_v23, %v322_v51 }
  0xba   :  { %v386_v55 = vadd.f32 %v985_v23, %v315_v53 }
  0xbb   :  { %v409_v56 = vmax.f32 %v393_v54, 0.0 }
  0xbc   :  { %v402_v57 = vmax.f32 %v386_v55, 0.0 }
  0xbd   :  { %481 = vmatmul.f32.gmra.mxu3 %v409_v56 }
  0xbe   :  { %v187_v59 = vpop.f32.mrf.mxu2  ;;  %460 = vmatmul.f32.gmra.mxu1 %v402_v57 }
  0xbf   :  { %v323_v61 = vmul.f32 %v290_v48, %v187_v59  ;;  %v170_v62 = vpop.f32.mrf.mxu0 }
  0xc0   :  { %v316_v63 = vmul.f32 %v255_v60, %v170_v62 }
  0xc1   :  { %v394_v0 = vadd.f32 %v985_v23, %v323_v61 }
  0xc2   :  { %v387_v1 = vadd.f32 %v985_v23, %v316_v63 }
  0xc3   :  { %v410_v2 = vmax.f32 %v394_v0, 0.0 }
  0xc4   :  { %v403_v3 = vmax.f32 %v387_v1, 0.0 }
  0xc5   :  { %484 = vmatmul.f32.gmra.mxu3 %v410_v2 }
  0xc6   :  { %v190_v5 = vpop.f32.mrf.mxu2  ;;  %463 = vmatmul.f32.gmra.mxu1 %v403_v3 }
  0xc7   :  { %v324_v7 = vmul.f32 %v295_v58, %v190_v5  ;;  %v172_v8 = vpop.f32.mrf.mxu0 }
  0xc8   :  { %v317_v9 = vmul.f32 %v260_v6, %v172_v8 }
  0xc9   :  { %v395_v10 = vadd.f32 %v985_v23, %v324_v7 }
  0xca   :  { %v388_v11 = vadd.f32 %v985_v23, %v317_v9 }
  0xcb   :  { %v411_v12 = vmax.f32 %v395_v10, 0.0 }
  0xcc   :  { %v404_v13 = vmax.f32 %v388_v11, 0.0 }
  0xcd   :  { %487 = vmatmul.f32.gmra.mxu3 %v411_v12 }
  0xce   :  { %v192_v15 = vpop.f32.mrf.mxu2  ;;  %466 = vmatmul.f32.gmra.mxu1 %v404_v13 }
  0xcf   :  { %v325_v17 = vmul.f32 %v300_v4, %v192_v15  ;;  %v175_v18 = vpop.f32.mrf.mxu0 }
  0xd0   :  { %v318_v19 = vmul.f32 %v265_v16, %v175_v18 }
  0xd1   :  { %v396_v20 = vadd.f32 %v985_v23, %v325_v17 }
  0xd2   :  { %v389_v21 = vadd.f32 %v985_v23, %v318_v19 }
  0xd3   :  { %v412_v22 = vmax.f32 %v396_v20, 0.0 }
  0xd4   :  { %v405_v24 = vmax.f32 %v389_v21, 0.0 }
  0xd5   :  { %490 = vmatmul.f32.gmra.mxu3 %v412_v22 }
  0xd6   :  { %v195_v25 = vpop.f32.mrf.mxu2  ;;  %469 = vmatmul.f32.gmra.mxu1 %v405_v24 }
  0xd7   :  { %v326_v27 = vmul.f32 %v305_v14, %v195_v25  ;;  %v177_v28 = vpop.f32.mrf.mxu0 }
  0xd8   :  { %v319_v29 = vmul.f32 %v270_v26, %v177_v28 }
  0xd9   :  { %v397_v30 = vadd.f32 %v985_v23, %v326_v27 }
  0xda   :  { %v390_v31 = vadd.f32 %v985_v23, %v319_v29 }
  0xdb   :  { %v413_v32 = vmax.f32 %v397_v30, 0.0 }
  0xdc   :  { %v406_v33 = vmax.f32 %v390_v31, 0.0 }
  0xdd   :  { %493 = vmatmul.f32.gmra.mxu3 %v413_v32 }
  0xde   :  { %v197_v35 = vpop.f32.mrf.mxu2  ;;  %472 = vmatmul.f32.gmra.mxu1 %v406_v33 }
  0xdf   :  { %v327_v36 = vmul.f32 %v310_v34, %v197_v35 }
  0xe1   :  { %v398_v37 = vadd.f32 %v985_v23, %v327_v36 }
  0xe3   :  { %v414_v38 = vmax.f32 %v398_v37, 0.0 }
  0xe5   :  { %496 = vmatmul.f32.gmra.mxu3 %v414_v38 }
 0x123   :  { %v452_v40 = vpop.f32.mrf.mxu1 }
 0x124   :  { %v453_v41 = vadd.f32 %v749_v39, %v452_v40 }
 0x126   :  { %500 = vmax.xlane.f32.xlu1 %v453_v41 }
 0x12b   :  { %v455_v42 = vpop.f32.mrf.mxu1 }
 0x12c   :  { %v456_v43 = vadd.f32 %v749_v39, %v455_v42 }
 0x12e   :  { %502 = vmax.xlane.f32.xlu2 %v456_v43 }
 0x130   :  { %v476_v44 = vpop.f32.mrf.mxu3 }
 0x131   :  { %v477_v46 = vadd.f32 %v749_v39, %v476_v44 }
 0x133   :  { %v458_v45 = vpop.f32.mrf.mxu1 }
 0x134   :  { %v459_v47 = vadd.f32 %v749_v39, %v458_v45 }
 0x136   :  { %516 = vmax.xlane.f32.xlu2 %v477_v46  ;;  %504 = vmax.xlane.f32.xlu0 %v459_v47 }
 0x138   :  { %v479_v48 = vpop.f32.mrf.mxu3 }
 0x139   :  { %v480_v49 = vadd.f32 %v749_v39, %v479_v48 }
 0x13b   :  { %v461_v23 = vpop.f32.mrf.mxu1 }
 0x13c   :  { %v462_v50 = vadd.f32 %v749_v39, %v461_v23 }
 0x13e   :  { %518 = vmax.xlane.f32.xlu0 %v480_v49  ;;  %506 = vmax.xlane.f32.xlu2 %v462_v50 }
 0x140   :  { %v482_v51 = vpop.f32.mrf.mxu3 }
 0x141   :  { %v483_v52 = vadd.f32 %v749_v39, %v482_v51 }
 0x143   :  { %520 = vmax.xlane.f32.xlu1 %v483_v52  ;;  %v464_v53 = vpop.f32.mrf.mxu1 }
 0x144   :  { %v1006_v55 = vadd.f32 %v749_v39, %v464_v53 }
 0x148   :  { %v485_v54 = vpop.f32.mrf.mxu3 }
 0x149   :  { %v1008_v56 = vadd.f32 %v749_v39, %v485_v54 }
 0x14b   :  { %522 = vmax.xlane.f32.xlu2 %v1008_v56  ;;  %508 = vmax.xlane.f32.xlu1 %v1006_v55  ;;  %v467_v57 = vpop.f32.mrf.mxu1 }
 0x14c   :  { %v1012_v59 = vadd.f32 %v749_v39, %v467_v57 }
 0x150   :  { %v488_v58 = vpop.f32.mrf.mxu3 }
 0x151   :  { %v1014_v60 = vadd.f32 %v749_v39, %v488_v58 }
 0x153   :  { %524 = vmax.xlane.f32.xlu0 %v1014_v60  ;;  %510 = vmax.xlane.f32.xlu2 %v1012_v59  ;;  %v470_v61 = vpop.f32.mrf.mxu1 }
 0x154   :  { %v1018_v63 = vadd.f32 %v749_v39, %v470_v61 }
 0x158   :  { %v491_v62 = vpop.f32.mrf.mxu3 }
 0x159   :  { %v1027_v4 = vadd.f32 %v749_v39, %v491_v62 }
 0x15b   :  { %512 = vmax.xlane.f32.xlu0 %v1018_v63  ;;  %v473_v0 = vpop.f32.mrf.mxu1 }
 0x15c   :  { %v1021_v1 = vadd.f32 %v749_v39, %v473_v0 }
 0x15e   :  { %514 = vmax.xlane.f32.xlu1 %v1021_v1 }
 0x160   :  { %v494_v2 = vpop.f32.mrf.mxu3 }
 0x161   :  { %v1024_v3 = vadd.f32 %v749_v39, %v494_v2 }
 0x163   :  { %528 = vmax.xlane.f32.xlu2 %v1024_v3 }
 0x166   :  { %526 = vmax.xlane.f32.xlu1 %v1027_v4 }
 0x168   :  { %v497_v5 = vpop.f32.mrf.mxu3 }
 0x169   :  { %v1030_v6 = vadd.f32 %v749_v39, %v497_v5 }
 0x16b   :  { %530 = vmax.xlane.f32.xlu0 %v1030_v6 }
 0x199   :  { %v501_v7 = vpop.xlane.xlu1 %500 }
 0x19a   :  { %v1033_v8 = vsub.f32 %v453_v41, %v501_v7 }
 0x19c   :  { %v548_v9 = vmul.f32 1.442695, %v1033_v8 }
 0x19e   :  { %750 = vpow2.f32 %v548_v9 }
 0x1a1   :  { %v503_v10 = vpop.xlane.xlu2 %502 }
 0x1a2   :  { %v1036_v11 = vsub.f32 %v456_v43, %v503_v10 }
 0x1a4   :  { %v751_v12 = vpop.eup %750  ;;  %v550_v13 = vmul.f32 1.442695, %v1036_v11 }
 0x1a5   :  { %580 = vadd.xlane.f32.xlu1 %v751_v12 }
 0x1a6   :  { %752 = vpow2.f32 %v550_v13 }
 0x1a9   :  { %v517_v14 = vpop.xlane.xlu2 %516  ;;  %v505_v15 = vpop.xlane.xlu0 %504 }
 0x1aa   :  { %v1039_v16 = vsub.f32 %v477_v46, %v517_v14  ;;  %v1042_v19 = vsub.f32 %v459_v47, %v505_v15 }
 0x1ac   :  { %v753_v17 = vpop.eup %752  ;;  %v564_v18 = vmul.f32 1.442695, %v1039_v16  ;;  %v552_v20 = vmul.f32 1.442695, %v1042_v19 }
 0x1ad   :  { %582 = vadd.xlane.f32.xlu2 %v753_v17 }
 0x1ae   :  { %754 = vpow2.f32 %v564_v18 }
 0x1af   :  { %756 = vpow2.f32 %v552_v20 }
 0x1b1   :  { %v519_v21 = vpop.xlane.xlu0 %518  ;;  %v507_v24 = vpop.xlane.xlu2 %506 }
 0x1b2   :  { %v1045_v22 = vsub.f32 %v480_v49, %v519_v21  ;;  %v1048_v27 = vsub.f32 %v462_v50, %v507_v24 }
 0x1b4   :  { %v755_v25 = vpop.eup %754  ;;  %v566_v26 = vmul.f32 1.442695, %v1045_v22  ;;  %v554_v31 = vmul.f32 1.442695, %v1048_v27 }
 0x1b5   :  { %596 = vadd.xlane.f32.xlu0 %v755_v25  ;;  %v757_v32 = vpop.eup %756 }
 0x1b6   :  { %758 = vpow2.f32 %v566_v26  ;;  %v521_v28 = vpop.xlane.xlu1 %520 }
 0x1b7   :  { %v1050_v29 = vsub.f32 %v483_v52, %v521_v28 }
 0x1b9   :  { %v568_v30 = vmul.f32 1.442695, %v1050_v29 }
 0x1bb   :  { %760 = vpow2.f32 %v568_v30 }
 0x1bc   :  { %v759_v33 = vpop.eup %758  ;;  %762 = vpow2.f32 %v554_v31 }
 0x1bd   :  { %584 = vadd.xlane.f32.xlu0 %v757_v32  ;;  %598 = vadd.xlane.f32.xlu1 %v759_v33 }
 0x1be   :  { %v523_v34 = vpop.xlane.xlu2 %522  ;;  %v509_v35 = vpop.xlane.xlu1 %508 }
 0x1bf   :  { %v1055_v36 = vsub.f32 %v1008_v56, %v523_v34  ;;  %v1058_v37 = vsub.f32 %v1006_v55, %v509_v35 }
 0x1c1   :  { %v761_v38 = vpop.eup %760  ;;  %v570_v39 = vmul.f32 1.442695, %v1055_v36  ;;  %v556_v40 = vmul.f32 1.442695, %v1058_v37 }
 0x1c2   :  { %600 = vadd.xlane.f32.xlu2 %v761_v38  ;;  %v763_v41 = vpop.eup %762 }
 0x1c3   :  { %764 = vpow2.f32 %v570_v39 }
 0x1c4   :  { %766 = vpow2.f32 %v556_v40 }
 0x1c5   :  { %586 = vadd.xlane.f32.xlu1 %v763_v41 }
 0x1c6   :  { %v525_v42 = vpop.xlane.xlu0 %524  ;;  %v511_v43 = vpop.xlane.xlu2 %510 }
 0x1c7   :  { %v1063_v44 = vsub.f32 %v1014_v60, %v525_v42  ;;  %v1066_v45 = vsub.f32 %v1012_v59, %v511_v43 }
 0x1c9   :  { %v765_v46 = vpop.eup %764  ;;  %v572_v47 = vmul.f32 1.442695, %v1063_v44  ;;  %v558_v48 = vmul.f32 1.442695, %v1066_v45 }
 0x1ca   :  { %v767_v23 = vpop.eup %766  ;;  %602 = vadd.xlane.f32.xlu0 %v765_v46 }
 0x1cb   :  { %768 = vpow2.f32 %v572_v47  ;;  %588 = vadd.xlane.f32.xlu2 %v767_v23 }
 0x1cc   :  { %770 = vpow2.f32 %v558_v48 }
 0x1ce   :  { %v513_v49 = vpop.xlane.xlu0 %512 }
 0x1cf   :  { %v1071_v50 = vsub.f32 %v1018_v63, %v513_v49 }
 0x1d1   :  { %v769_v51 = vpop.eup %768  ;;  %v560_v52 = vmul.f32 1.442695, %v1071_v50  ;;  %v515_v53 = vpop.xlane.xlu1 %514 }
 0x1d2   :  { %v771_v54 = vpop.eup %770  ;;  %604 = vadd.xlane.f32.xlu1 %v769_v51  ;;  %v1075_v55 = vsub.f32 %v1021_v1, %v515_v53 }
 0x1d3   :  { %772 = vpow2.f32 %v560_v52  ;;  %590 = vadd.xlane.f32.xlu0 %v771_v54 }
 0x1d4   :  { %v562_v56 = vmul.f32 1.442695, %v1075_v55 }
 0x1d6   :  { %774 = vpow2.f32 %v562_v56  ;;  %v529_v57 = vpop.xlane.xlu2 %528 }
 0x1d7   :  { %v1079_v58 = vsub.f32 %v1024_v3, %v529_v57 }
 0x1d9   :  { %v773_v59 = vpop.eup %772  ;;  %v576_v60 = vmul.f32 1.442695, %v1079_v58  ;;  %v527_v61 = vpop.xlane.xlu1 %526 }
 0x1da   :  { %592 = vadd.xlane.f32.xlu1 %v773_v59  ;;  %v1083_v62 = vsub.f32 %v1027_v4, %v527_v61 }
 0x1db   :  { %776 = vpow2.f32 %v576_v60 }
 0x1dc   :  { %v775_v63 = vpop.eup %774  ;;  %v574_v0 = vmul.f32 1.442695, %v1083_v62 }
 0x1dd   :  { %594 = vadd.xlane.f32.xlu2 %v775_v63 }
 0x1de   :  { %778 = vpow2.f32 %v574_v0  ;;  %v531_v1 = vpop.xlane.xlu0 %530 }
 0x1df   :  { %v1087_v2 = vsub.f32 %v1030_v6, %v531_v1 }
 0x1e1   :  { %v777_v3 = vpop.eup %776  ;;  %v578_v5 = vmul.f32 1.442695, %v1087_v2 }
 0x1e2   :  { %608 = vadd.xlane.f32.xlu0 %v777_v3 }
 0x1e3   :  { %780 = vpow2.f32 %v578_v5 }
 0x1e4   :  { %v779_v7 = vpop.eup %778 }
 0x1e5   :  { %606 = vadd.xlane.f32.xlu2 %v779_v7 }
 0x1e9   :  { %v781_v9 = vpop.eup %780 }
 0x1ea   :  { %610 = vadd.xlane.f32.xlu1 %v781_v9 }
 0x218   :  { %v581_v4 = vpop.xlane.xlu1 %580 }
 0x219   :  { %782 = vlog2.f32 %v581_v4 }
 0x21f   :  { %v783_v10 = vpop.eup %782 }
 0x220   :  { %v613_v12 = vmul.f32 0.6931472, %v783_v10  ;;  %v583_v13 = vpop.xlane.xlu2 %582 }
 0x221   :  { %784 = vlog2.f32 %v583_v13 }
 0x222   :  { %v644_v14 = vsub.f32 %v1033_v8, %v613_v12 }
 0x224   :  { %660 = vst [vmem:[%s1160_s6] sm:$0xff] %v644_v14 }
 0x227   :  { %v785_v6 = vpop.eup %784 }
 0x228   :  { %v615_v15 = vmul.f32 0.6931472, %v785_v6  ;;  %v597_v17 = vpop.xlane.xlu0 %596 }
 0x229   :  { %786 = vlog2.f32 %v597_v17 }
 0x22a   :  { %v645_v18 = vsub.f32 %v1036_v11, %v615_v15 }
 0x22c   :  { %661 = vst [vmem:[%s1160_s6 + $0x8] sm:$0xff] %v645_v18 }
 0x22f   :  { %v787_v20 = vpop.eup %786 }
 0x230   :  { %v629_v21 = vmul.f32 0.6931472, %v787_v20  ;;  %v585_v24 = vpop.xlane.xlu0 %584  ;;  %v599_v25 = vpop.xlane.xlu1 %598 }
 0x231   :  { %788 = vlog2.f32 %v585_v24 }
 0x232   :  { %v652_v8 = vsub.f32 %v1039_v16, %v629_v21  ;;  %790 = vlog2.f32 %v599_v25 }
 0x234   :  { %668 = vst [vmem:[%s1160_s6 + $0x40] sm:$0xff] %v652_v8 }
 0x235   :  { %v601_v26 = vpop.xlane.xlu2 %600 }
 0x236   :  { %792 = vlog2.f32 %v601_v26 }
 0x237   :  { %v789_v28 = vpop.eup %788 }
 0x238   :  { %v791_v11 = vpop.eup %790  ;;  %v617_v30 = vmul.f32 0.6931472, %v789_v28  ;;  %v587_v31 = vpop.xlane.xlu1 %586 }
 0x239   :  { %v631_v32 = vmul.f32 0.6931472, %v791_v11  ;;  %794 = vlog2.f32 %v587_v31 }
 0x23a   :  { %v646_v33 = vsub.f32 %v1042_v19, %v617_v30 }
 0x23b   :  { %v653_v34 = vsub.f32 %v1045_v22, %v631_v32 }
 0x23c   :  { %v793_v35 = vpop.eup %792  ;;  %662 = vst [vmem:[%s1160_s6 + $0x10] sm:$0xff] %v646_v33 }
 0x23d   :  { %669 = vst [vmem:[%s1160_s6 + $0x48] sm:$0xff] %v653_v34  ;;  %v633_v16 = vmul.f32 0.6931472, %v793_v35  ;;  %v603_v38 = vpop.xlane.xlu0 %602 }
 0x23e   :  { %v589_v39 = vpop.xlane.xlu2 %588  ;;  %796 = vlog2.f32 %v603_v38 }
 0x23f   :  { %v795_v40 = vpop.eup %794  ;;  %v654_v41 = vsub.f32 %v1050_v29, %v633_v16  ;;  %798 = vlog2.f32 %v589_v39 }
 0x240   :  { %v619_v19 = vmul.f32 0.6931472, %v795_v40 }
 0x241   :  { %670 = vst [vmem:[%s1160_s6 + $0x50] sm:$0xff] %v654_v41 }
 0x242   :  { %v647_v22 = vsub.f32 %v1048_v27, %v619_v19 }
 0x244   :  { %v797_v42 = vpop.eup %796  ;;  %663 = vst [vmem:[%s1160_s6 + $0x18] sm:$0xff] %v647_v22 }
 0x245   :  { %v799_v43 = vpop.eup %798  ;;  %v635_v46 = vmul.f32 0.6931472, %v797_v42  ;;  %v605_v47 = vpop.xlane.xlu1 %604 }
 0x246   :  { %v621_v48 = vmul.f32 0.6931472, %v799_v43  ;;  %v591_v23 = vpop.xlane.xlu0 %590  ;;  %800 = vlog2.f32 %v605_v47 }
 0x247   :  { %v655_v29 = vsub.f32 %v1055_v36, %v635_v46  ;;  %802 = vlog2.f32 %v591_v23 }
 0x248   :  { %v648_v49 = vsub.f32 %v1058_v37, %v621_v48 }
 0x249   :  { %671 = vst [vmem:[%s1160_s6 + $0x58] sm:$0xff] %v655_v29 }
 0x24a   :  { %664 = vst [vmem:[%s1160_s6 + $0x20] sm:$0xff] %v648_v49 }
 0x24c   :  { %v801_v27 = vpop.eup %800 }
 0x24d   :  { %v803_v51 = vpop.eup %802  ;;  %v637_v52 = vmul.f32 0.6931472, %v801_v27  ;;  %v593_v53 = vpop.xlane.xlu1 %592 }
 0x24e   :  { %v623_v54 = vmul.f32 0.6931472, %v803_v51  ;;  %804 = vlog2.f32 %v593_v53 }
 0x24f   :  { %v656_v56 = vsub.f32 %v1063_v44, %v637_v52 }
 0x250   :  { %v649_v36 = vsub.f32 %v1066_v45, %v623_v54  ;;  %v595_v57 = vpop.xlane.xlu2 %594 }
 0x251   :  { %672 = vst [vmem:[%s1160_s6 + $0x60] sm:$0xff] %v656_v56  ;;  %806 = vlog2.f32 %v595_v57 }
 0x252   :  { %665 = vst [vmem:[%s1160_s6 + $0x28] sm:$0xff] %v649_v36 }
 0x254   :  { %v805_v37 = vpop.eup %804 }
 0x255   :  { %v625_v59 = vmul.f32 0.6931472, %v805_v37  ;;  %v609_v60 = vpop.xlane.xlu0 %608 }
 0x256   :  { %808 = vlog2.f32 %v609_v60 }
 0x257   :  { %v807_v61 = vpop.eup %806  ;;  %v650_v63 = vsub.f32 %v1071_v50, %v625_v59 }
 0x258   :  { %v627_v44 = vmul.f32 0.6931472, %v807_v61  ;;  %v607_v0 = vpop.xlane.xlu2 %606 }
 0x259   :  { %666 = vst [vmem:[%s1160_s6 + $0x30] sm:$0xff] %v650_v63  ;;  %810 = vlog2.f32 %v607_v0 }
 0x25a   :  { %v651_v45 = vsub.f32 %v1075_v55, %v627_v44 }
 0x25c   :  { %v809_v1 = vpop.eup %808  ;;  %667 = vst [vmem:[%s1160_s6 + $0x38] sm:$0xff] %v651_v45 }
 0x25d   :  { %v641_v3 = vmul.f32 0.6931472, %v809_v1  ;;  %v611_v5 = vpop.xlane.xlu1 %610 }
 0x25e   :  { %812 = vlog2.f32 %v611_v5 }
 0x25f   :  { %v811_v7 = vpop.eup %810  ;;  %v658_v50 = vsub.f32 %v1079_v58, %v641_v3 }
 0x260   :  { %v639_v9 = vmul.f32 0.6931472, %v811_v7 }
 0x261   :  { %674 = vst [vmem:[%s1160_s6 + $0x70] sm:$0xff] %v658_v50 }
 0x262   :  { %v657_v4 = vsub.f32 %v1083_v62, %v639_v9 }
 0x264   :  { %v813_v10 = vpop.eup %812  ;;  %673 = vst [vmem:[%s1160_s6 + $0x68] sm:$0xff] %v657_v4 }
 0x265   :  { %v643_v55 = vmul.f32 0.6931472, %v813_v10 }
 0x267   :  { %v659_v12 = vsub.f32 %v1087_v2, %v643_v55 }
 0x269   :  { %675 = vst [vmem:[%s1160_s6 + $0x78] sm:$0xff] %v659_v12 }

</bundles_post_ra>
